<compile_context>
chip_gen: v7x
topology: tpu7x:2x2x1
jax: 0.10.0
libtpu: 0.0.40
codegen_flags: <defaults>
</compile_context>

<pallas_src>
from functools import partial

import jax
import jax.numpy as jnp
import numpy as np
from jax.experimental import pallas as pl
from jax.experimental.pallas import tpu as pltpu

BN_EPS = 1e-5


def _stage_kernel(x_ref, w_ref, gb_ref, o_ref, carry_ref, xcat_ref, *, seq_len):
    """One grid step == one BasicBlock of the stage.

    x_ref    : (NL, Cp)      bf16  stage input, channels-last rows (row = n*L + l)
    w_ref    : (2, 3*Cp, Cp) bf16  this block's [conv1, conv2], rows = taps [l-1|l|l+1]
    gb_ref   : (4, Cp)       f32   this block's [gamma1, beta1, gamma2, beta2]
    o_ref    : (NL, Cp)      bf16  stage output (constant index -> resident)
    carry_ref: (NL, Cp)      bf16  VMEM scratch: inter-block activation carry
    xcat_ref : (NL, 3*Cp)    bf16  VMEM scratch: fused 3-tap conv operand
    """
    blk = pl.program_id(0)

    @pl.when(blk == 0)
    def _():
        carry_ref[...] = x_ref[...]          # seed carry with the stage input

    xin = carry_ref[...].astype(jnp.float32)  # block input == residual identity
    R, Cp = xin.shape
    L = seq_len

    # Conv padding masks, built once per block and shared by both convs.
    # Pre-broadcast to (R, Cp) so each jnp.where reuse does not re-emit a
    # broadcast_in_dim.
    l_idx = jax.lax.broadcasted_iota(jnp.int32, (R, Cp), 0) % L
    mask_left = l_idx != 0                # row l == 0 has no left neighbor
    mask_right = l_idx != (L - 1)         # row l == L-1 has no right neighbor

    def conv3_operand(inp):
        # Build [x[l-1] | x[l] | x[l+1]] directly into the bf16 scratch
        # (no f32 concat temp).  Neighbor gather = sublane roll (XLU);
        # boundary masking kept in f32 (v5e has no bf16 VPU).
        xcat_ref[:, Cp:2 * Cp] = inp.astype(jnp.bfloat16)
        left = jnp.where(mask_left, pltpu.roll(inp, shift=1, axis=0), 0.0)
        xcat_ref[:, 0:Cp] = left.astype(jnp.bfloat16)
        right = jnp.where(mask_right, pltpu.roll(inp, shift=R - 1, axis=0), 0.0)
        xcat_ref[:, 2 * Cp:3 * Cp] = right.astype(jnp.bfloat16)
        return xcat_ref[...]

    def batchnorm(y, g, b):
        # Training-mode BatchNorm1d (biased var), two-pass / centered for
        # numerical robustness, fused scale/shift apply.
        mean = jnp.mean(y, axis=0, keepdims=True)
        yc = y - mean
        var = jnp.mean(yc * yc, axis=0, keepdims=True)
        return yc * (g * jax.lax.rsqrt(var + BN_EPS)) + b

    gb = gb_ref[...]
    g1, b1, g2, b2 = gb[0:1], gb[1:2], gb[2:3], gb[3:4]

    # conv1 -> bn1 -> relu
    out = jnp.dot(conv3_operand(xin), w_ref[0], preferred_element_type=jnp.float32)
    out = jnp.maximum(batchnorm(out, g1, b1), 0.0)
    # conv2 -> bn2
    out = jnp.dot(conv3_operand(out), w_ref[1], preferred_element_type=jnp.float32)
    out = batchnorm(out, g2, b2)
    # identity residual + relu
    res = jnp.maximum(out + xin, 0.0).astype(jnp.bfloat16)

    carry_ref[...] = res     # carry to the next block (stays in VMEM)
    o_ref[...] = res         # stage output (written back after last block)


# --------------------------- host-side wrappers -----------------------------
def _round_up(x, m):
    return ((x + m - 1) // m) * m


def prepare_stage_params(blocks_raw, channels):
    """Pad to Cp lanes, flatten conv weights to (3*Cp, Cp), cast to bf16.

    Done ONCE per stage and reused across forward calls (hoisted out of the
    per-forward path).  Returns (w_stack (B,2,3Cp,Cp) bf16, gb_stack (B,4,Cp) f32).
    """
    cp = _round_up(channels, 128)

    def wflat(w):  # (Cout, Cin, 3) PyTorch Conv1d layout
        co, ci, _ = w.shape
        wp = jnp.pad(w, ((0, cp - co), (0, cp - ci), (0, 0)))
        # -> (3, Cin_p, Cout_p) -> (3*Cin_p, Cout_p); row block k matches the
        #    xcat order [x[l-1] | x[l] | x[l+1]] built in the kernel.
        return jnp.transpose(wp, (2, 1, 0)).reshape(3 * cp, cp).astype(jnp.bfloat16)

    def vec(v):
        # NOTE: padded lanes MUST be zero.  BN in padded lanes sees var == 0,
        # so scale = gamma_pad * rsqrt(eps); gamma_pad == 0 and beta_pad == 0
        # keep those lanes exactly 0 through the whole stage.
        return jnp.pad(v, (0, cp - v.shape[0])).astype(jnp.float32)

    w_stack, gb_stack = [], []
    for (w1, w2, g1, b1, g2, b2) in blocks_raw:
        w_stack.append(jnp.stack([wflat(w1), wflat(w2)]))                 # (2,3Cp,Cp)
        gb_stack.append(jnp.stack([vec(g1), vec(b1), vec(g2), vec(b2)]))  # (4,Cp)
    return jnp.stack(w_stack), jnp.stack(gb_stack)


@jax.jit
def resnet_stage_forward(x_ncl, w_stack, gb_stack):
    """Chain of identity BasicBlocks fused into ONE pallas_call.

    x_ncl: (N, C, L) f32.  Layout work (NCL -> channels-last rows, pad channels
    to a 128-lane multiple, bf16 cast) happens once per stage at the HBM
    boundary; the activation stays resident in VMEM across all blocks.
    """
    N, C, L = x_ncl.shape
    B, _, _, Cp = w_stack.shape
    NL = N * L

    x2d = jnp.transpose(x_ncl, (0, 2, 1)).reshape(NL, C)
    x2d = jnp.pad(x2d, ((0, 0), (0, Cp - C))).astype(jnp.bfloat16)

    out2d = pl.pallas_call(
        partial(_stage_kernel, seq_len=L),
        out_shape=jax.ShapeDtypeStruct((NL, Cp), jnp.bfloat16),
        grid=(B,),
        in_specs=[
            pl.BlockSpec((NL, Cp), lambda b: (0, 0)),                   # resident input
            pl.BlockSpec((None, 2, 3 * Cp, Cp), lambda b: (b, 0, 0, 0)),  # per-block convs
            pl.BlockSpec((None, 4, Cp), lambda b: (b, 0, 0)),             # per-block BN params
        ],
        out_specs=pl.BlockSpec((NL, Cp), lambda b: (0, 0)),             # resident output
        scratch_shapes=[
            pltpu.VMEM((NL, Cp), jnp.bfloat16),       # inter-block carry
            pltpu.VMEM((NL, 3 * Cp), jnp.bfloat16),   # fused 3-tap conv operand
        ],
        compiler_params=pltpu.CompilerParams(
            dimension_semantics=("arbitrary",),       # block axis is sequential (carry)
            vmem_limit_bytes=32 * 1024 * 1024),       # safe on v7x (64 MiB physical)
    )(x2d, w_stack, gb_stack)

    out = out2d[:, :C].astype(jnp.float32).reshape(N, L, C)
    return jnp.transpose(out, (0, 2, 1))


# ---------------- pure-JAX reference (for correctness check) ----------------
def _conv1d_ref(x, w):  # x: (N, Cin, L), w: (Cout, Cin, 3), pad=1, stride=1
    L = x.shape[2]
    xp = jnp.pad(x, ((0, 0), (0, 0), (1, 1)))
    return sum(jnp.einsum('ncl,oc->nol', xp[:, :, k:k + L], w[:, :, k])
               for k in range(3))


def _bn_ref(y, g, b):  # training-mode batch stats, biased var
    mean = y.mean(axis=(0, 2), keepdims=True)
    var = y.var(axis=(0, 2), keepdims=True)
    return (y - mean) / jnp.sqrt(var + BN_EPS) * g[None, :, None] + b[None, :, None]


def _basic_block_ref(x, w1, w2, g1, b1, g2, b2):
    out = jnp.maximum(_bn_ref(_conv1d_ref(x, w1), g1, b1), 0.0)
    out = _bn_ref(_conv1d_ref(out, w2), g2, b2)
    return jnp.maximum(out + x, 0.0)


def _stage_ref(x, blocks_raw):
    for raw in blocks_raw:
        x = _basic_block_ref(x, *raw)
    return x


if __name__ == "__main__":
    # Small shapes consistent with ResNet layer1: 2 identity BasicBlocks,
    # inplanes == planes == 64, stride=1, downsample=None.
    N, C, L = 2, 64, 16
    key = jax.random.PRNGKey(0)
    keys = jax.random.split(key, 13)

    x = jax.random.normal(keys[0], (N, C, L), jnp.float32)

    def make_block(ks):
        w1 = jax.random.normal(ks[0], (C, C, 3), jnp.float32) * 0.08  # conv1
        w2 = jax.random.normal(ks[1], (C, C, 3), jnp.float32) * 0.08  # conv2
        g1 = 1.0 + 0.1 * jax.random.normal(ks[2], (C,), jnp.float32)  # bn1 gamma
        b1 = 0.1 * jax.random.normal(ks[3], (C,), jnp.float32)        # bn1 beta
        g2 = 1.0 + 0.1 * jax.random.normal(ks[4], (C,), jnp.float32)  # bn2 gamma
        b2 = 0.1 * jax.random.normal(ks[5], (C,), jnp.float32)        # bn2 beta
        return (w1, w2, g1, b1, g2, b2)

    blocks_raw = [make_block(keys[1:7]), make_block(keys[7:13])]

    # Parameter prep is hoisted out of the forward path (prepare once, reuse).
    w_stack, gb_stack = prepare_stage_params(blocks_raw, C)

    out = resnet_stage_forward(x, w_stack, gb_stack)
    out = jax.block_until_ready(out)

    ref = _stage_ref(x, blocks_raw)
    # bf16 matmul operands + bf16 activation I/O (f32 accumulation / BN stats)
    # => loosened tolerance.
    np.testing.assert_allclose(np.asarray(out), np.asarray(ref),
                               rtol=5e-2, atol=5e-2)
    print("KERNEL_OK")
</pallas_src>

<mosaic_0001>
module attributes {stable_mosaic.version = 11 : i64} {
  func.func @_stage_kernel(%arg0: i32, %arg1: memref<32x128xbf16, #tpu.memory_space<vmem>>, %arg2: memref<1x2x384x128xbf16, #tpu.memory_space<vmem>>, %arg3: memref<1x4x128xf32, #tpu.memory_space<vmem>>, %arg4: memref<32x128xbf16, #tpu.memory_space<vmem>>, %arg5: memref<32x128xbf16, #tpu.memory_space<vmem>>, %arg6: memref<32x384xbf16, #tpu.memory_space<vmem>>) attributes {dimension_semantics = [#tpu.dimension_semantics<arbitrary>], iteration_bounds = array<i64: 2>, scalar_prefetch = 0 : i64, scratch_operands = 2 : i64, tpu.core_type = #tpu.core_type<tc>, window_params = [{pipeline_mode = #tpu.pipeline_mode<synchronous>, transform_indices = @transform_0, window_bounds = array<i64: 32, 128>}, {transform_indices = @transform_1, window_bounds = array<i64: 1, 2, 384, 128>}, {transform_indices = @transform_2, window_bounds = array<i64: 1, 4, 128>}, {pipeline_mode = #tpu.pipeline_mode<synchronous>, transform_indices = @transform_3, window_bounds = array<i64: 32, 128>}]} {
    %c0_i32 = arith.constant 0 : i32
    %0 = arith.cmpi eq, %arg0, %c0_i32 : i32
    %1 = arith.extui %0 : i1 to i32
    %c0_i32_0 = arith.constant 0 : i32
    %2 = arith.cmpi ne, %1, %c0_i32_0 : i32
    scf.if %2 {
      %c0_55 = arith.constant 0 : index
      %c0_56 = arith.constant 0 : index
      %110 = vector.load %arg1[%c0_55, %c0_56] : memref<32x128xbf16, #tpu.memory_space<vmem>>, vector<32x128xbf16>
      %c0_57 = arith.constant 0 : index
      %c0_58 = arith.constant 0 : index
      %111 = vector.load %arg5[%c0_57, %c0_58] : memref<32x128xbf16, #tpu.memory_space<vmem>>, vector<32x128xbf16>
      tpu.vector_store %arg5[%c0_57, %c0_58], %110 {strides = array<i32>} : memref<32x128xbf16, #tpu.memory_space<vmem>>, vector<32x128xbf16>,
    } else {
    }
    %c0 = arith.constant 0 : index
    %c0_1 = arith.constant 0 : index
    %3 = vector.load %arg5[%c0, %c0_1] : memref<32x128xbf16, #tpu.memory_space<vmem>>, vector<32x128xbf16>
    %4 = arith.extf %3 : vector<32x128xbf16> to vector<32x128xf32>
    %5 = tpu.iota {dimensions = array<i32: 0>} : vector<32x128xi32>
    %c16_i32 = arith.constant 16 : i32
    %c0_i32_2 = arith.constant 0 : i32
    %6 = arith.cmpi eq, %c16_i32, %c0_i32_2 : i32
    %c1_i32 = arith.constant 1 : i32
    %7 = arith.select %6, %c1_i32, %c16_i32 : i32
    %8 = vector.broadcast %7 : i32 to vector<32x128xi32>
    %9 = arith.remsi %5, %8 : vector<32x128xi32>
    %c0_i32_3 = arith.constant 0 : i32
    %10 = vector.broadcast %c0_i32_3 : i32 to vector<32x128xi32>
    %11 = arith.cmpi ne, %9, %10 : vector<32x128xi32>
    %c0_i32_4 = arith.constant 0 : i32
    %12 = vector.broadcast %c0_i32_4 : i32 to vector<32x128xi32>
    %13 = arith.cmpi slt, %9, %12 : vector<32x128xi32>
    %c0_i32_5 = arith.constant 0 : i32
    %14 = arith.cmpi slt, %7, %c0_i32_5 : i32
    %15 = vector.broadcast %14 : i1 to vector<32x128xi1>
    %16 = vector.broadcast %15 : vector<32x128xi1> to vector<32x128xi1>
    %17 = arith.xori %13, %16 : vector<32x128xi1>
    %18 = arith.andi %17, %11 : vector<32x128xi1>
    %19 = vector.broadcast %7 : i32 to vector<32x128xi32>
    %20 = arith.addi %9, %19 : vector<32x128xi32>
    %21 = arith.select %18, %20, %9 : vector<32x128xi1>, vector<32x128xi32>
    %c0_i32_6 = arith.constant 0 : i32
    %22 = vector.broadcast %c0_i32_6 : i32 to vector<32x128xi32>
    %23 = arith.cmpi ne, %21, %22 : vector<32x128xi32>
    %c15_i32 = arith.constant 15 : i32
    %24 = vector.broadcast %c15_i32 : i32 to vector<32x128xi32>
    %25 = arith.cmpi ne, %21, %24 : vector<32x128xi32>
    %c0_7 = arith.constant 0 : index
    %c0_8 = arith.constant 0 : index
    %c0_9 = arith.constant 0 : index
    %26 = vector.load %arg3[%c0_7, %c0_8, %c0_9] : memref<1x4x128xf32, #tpu.memory_space<vmem>>, vector<1x4x128xf32>
    %27 = vector.shape_cast %26 : vector<1x4x128xf32> to vector<4x128xf32>
    %28 = vector.extract_strided_slice %27 {offsets = [0, 0], sizes = [1, 128], strides = [1, 1]} : vector<4x128xf32> to vector<1x128xf32>
    %29 = vector.extract_strided_slice %27 {offsets = [1, 0], sizes = [1, 128], strides = [1, 1]} : vector<4x128xf32> to vector<1x128xf32>
    %30 = vector.extract_strided_slice %27 {offsets = [2, 0], sizes = [1, 128], strides = [1, 1]} : vector<4x128xf32> to vector<1x128xf32>
    %31 = vector.extract_strided_slice %27 {offsets = [3, 0], sizes = [1, 128], strides = [1, 1]} : vector<4x128xf32> to vector<1x128xf32>
    %32 = arith.truncf %4 : vector<32x128xf32> to vector<32x128xbf16>
    %c0_10 = arith.constant 0 : index
    %c128 = arith.constant 128 : index
    %33 = vector.load %arg6[%c0_10, %c128] : memref<32x384xbf16, #tpu.memory_space<vmem>>, vector<32x128xbf16>
    tpu.vector_store %arg6[%c0_10, %c128], %32 {strides = array<i32>} : memref<32x384xbf16, #tpu.memory_space<vmem>>, vector<32x128xbf16>,
    %c1_i32_11 = arith.constant 1 : i32
    %34 = tpu.dynamic_rotate %4 by %c1_i32_11 dim 0 : vector<32x128xf32>, i32 -> vector<32x128xf32>
    %cst = arith.constant 0.000000e+00 : f32
    %35 = vector.broadcast %cst : f32 to vector<32x128xf32>
    %36 = arith.select %23, %34, %35 : vector<32x128xi1>, vector<32x128xf32>
    %37 = arith.truncf %36 : vector<32x128xf32> to vector<32x128xbf16>
    %c0_12 = arith.constant 0 : index
    %c0_13 = arith.constant 0 : index
    %38 = vector.load %arg6[%c0_12, %c0_13] : memref<32x384xbf16, #tpu.memory_space<vmem>>, vector<32x128xbf16>
    tpu.vector_store %arg6[%c0_12, %c0_13], %37 {strides = array<i32>} : memref<32x384xbf16, #tpu.memory_space<vmem>>, vector<32x128xbf16>,
    %c31_i32 = arith.constant 31 : i32
    %39 = tpu.dynamic_rotate %4 by %c31_i32 dim 0 : vector<32x128xf32>, i32 -> vector<32x128xf32>
    %cst_14 = arith.constant 0.000000e+00 : f32
    %40 = vector.broadcast %cst_14 : f32 to vector<32x128xf32>
    %41 = arith.select %25, %39, %40 : vector<32x128xi1>, vector<32x128xf32>
    %42 = arith.truncf %41 : vector<32x128xf32> to vector<32x128xbf16>
    %c0_15 = arith.constant 0 : index
    %c256 = arith.constant 256 : index
    %43 = vector.load %arg6[%c0_15, %c256] : memref<32x384xbf16, #tpu.memory_space<vmem>>, vector<32x128xbf16>
    tpu.vector_store %arg6[%c0_15, %c256], %42 {strides = array<i32>} : memref<32x384xbf16, #tpu.memory_space<vmem>>, vector<32x128xbf16>,
    %c0_16 = arith.constant 0 : index
    %c0_17 = arith.constant 0 : index
    %44 = vector.load %arg6[%c0_16, %c0_17] : memref<32x384xbf16, #tpu.memory_space<vmem>>, vector<32x384xbf16>
    %c0_18 = arith.constant 0 : index
    %c0_19 = arith.constant 0 : index
    %c0_20 = arith.constant 0 : index
    %c0_21 = arith.constant 0 : index
    %45 = vector.load %arg2[%c0_18, %c0_19, %c0_20, %c0_21] : memref<1x2x384x128xbf16, #tpu.memory_space<vmem>>, vector<1x1x384x128xbf16>
    %46 = vector.shape_cast %45 : vector<1x1x384x128xbf16> to vector<384x128xbf16>
    %cst_22 = arith.constant dense<0.000000e+00> : vector<32x128xf32>
    %47 = tpu.matmul %44, %46, %cst_22 {dimension_numbers = #tpu.dot_dimension_numbers<[1], [0], [0], [1], [0, 0, 1, 1], [], []>} : vector<32x384xbf16>, vector<384x128xbf16>, vector<32x128xf32> -> vector<32x128xf32>
    %cst_23 = arith.constant dense<0.000000e+00> : vector<128xf32>
    %48 = vector.multi_reduction <add>, %47, %cst_23 [0] : vector<32x128xf32> to vector<128xf32>
    %49 = vector.shape_cast %48 : vector<128xf32> to vector<1x128xf32>
    %cst_24 = arith.constant 3.200000e+01 : f32
    %50 = vector.broadcast %cst_24 : f32 to vector<1x128xf32>
    %51 = arith.divf %49, %50 : vector<1x128xf32>
    %52 = vector.broadcast %51 : vector<1x128xf32> to vector<32x128xf32>
    %53 = arith.subf %47, %52 : vector<32x128xf32>
    %54 = arith.mulf %53, %53 : vector<32x128xf32>
    %cst_25 = arith.constant dense<0.000000e+00> : vector<128xf32>
    %55 = vector.multi_reduction <add>, %54, %cst_25 [0] : vector<32x128xf32> to vector<128xf32>
    %56 = vector.shape_cast %55 : vector<128xf32> to vector<1x128xf32>
    %cst_26 = arith.constant 3.200000e+01 : f32
    %57 = vector.broadcast %cst_26 : f32 to vector<1x128xf32>
    %58 = arith.divf %56, %57 : vector<1x128xf32>
    %cst_27 = arith.constant 9.99999974E-6 : f32
    %59 = vector.broadcast %cst_27 : f32 to vector<1x128xf32>
    %60 = arith.addf %58, %59 : vector<1x128xf32>
    %61 = math.rsqrt %60 : vector<1x128xf32>
    %62 = arith.mulf %28, %61 : vector<1x128xf32>
    %63 = vector.broadcast %62 : vector<1x128xf32> to vector<32x128xf32>
    %64 = arith.mulf %53, %63 : vector<32x128xf32>
    %65 = vector.broadcast %29 : vector<1x128xf32> to vector<32x128xf32>
    %66 = arith.addf %64, %65 : vector<32x128xf32>
    %cst_28 = arith.constant 0.000000e+00 : f32
    %67 = vector.broadcast %cst_28 : f32 to vector<32x128xf32>
    %68 = arith.maximumf %66, %67 : vector<32x128xf32>
    %69 = arith.truncf %68 : vector<32x128xf32> to vector<32x128xbf16>
    %c0_29 = arith.constant 0 : index
    %c128_30 = arith.constant 128 : index
    %70 = vector.load %arg6[%c0_29, %c128_30] : memref<32x384xbf16, #tpu.memory_space<vmem>>, vector<32x128xbf16>
    tpu.vector_store %arg6[%c0_29, %c128_30], %69 {strides = array<i32>} : memref<32x384xbf16, #tpu.memory_space<vmem>>, vector<32x128xbf16>,
    %c1_i32_31 = arith.constant 1 : i32
    %71 = tpu.dynamic_rotate %68 by %c1_i32_31 dim 0 : vector<32x128xf32>, i32 -> vector<32x128xf32>
    %cst_32 = arith.constant 0.000000e+00 : f32
    %72 = vector.broadcast %cst_32 : f32 to vector<32x128xf32>
    %73 = arith.select %23, %71, %72 : vector<32x128xi1>, vector<32x128xf32>
    %74 = arith.truncf %73 : vector<32x128xf32> to vector<32x128xbf16>
    %c0_33 = arith.constant 0 : index
    %c0_34 = arith.constant 0 : index
    %75 = vector.load %arg6[%c0_33, %c0_34] : memref<32x384xbf16, #tpu.memory_space<vmem>>, vector<32x128xbf16>
    tpu.vector_store %arg6[%c0_33, %c0_34], %74 {strides = array<i32>} : memref<32x384xbf16, #tpu.memory_space<vmem>>, vector<32x128xbf16>,
    %c31_i32_35 = arith.constant 31 : i32
    %76 = tpu.dynamic_rotate %68 by %c31_i32_35 dim 0 : vector<32x128xf32>, i32 -> vector<32x128xf32>
    %cst_36 = arith.constant 0.000000e+00 : f32
    %77 = vector.broadcast %cst_36 : f32 to vector<32x128xf32>
    %78 = arith.select %25, %76, %77 : vector<32x128xi1>, vector<32x128xf32>
    %79 = arith.truncf %78 : vector<32x128xf32> to vector<32x128xbf16>
    %c0_37 = arith.constant 0 : index
    %c256_38 = arith.constant 256 : index
    %80 = vector.load %arg6[%c0_37, %c256_38] : memref<32x384xbf16, #tpu.memory_space<vmem>>, vector<32x128xbf16>
    tpu.vector_store %arg6[%c0_37, %c256_38], %79 {strides = array<i32>} : memref<32x384xbf16, #tpu.memory_space<vmem>>, vector<32x128xbf16>,
    %c0_39 = arith.constant 0 : index
    %c0_40 = arith.constant 0 : index
    %81 = vector.load %arg6[%c0_39, %c0_40] : memref<32x384xbf16, #tpu.memory_space<vmem>>, vector<32x384xbf16>
    %c0_41 = arith.constant 0 : index
    %c1 = arith.constant 1 : index
    %c0_42 = arith.constant 0 : index
    %c0_43 = arith.constant 0 : index
    %82 = vector.load %arg2[%c0_41, %c1, %c0_42, %c0_43] : memref<1x2x384x128xbf16, #tpu.memory_space<vmem>>, vector<1x1x384x128xbf16>
    %83 = vector.shape_cast %82 : vector<1x1x384x128xbf16> to vector<384x128xbf16>
    %cst_44 = arith.constant dense<0.000000e+00> : vector<32x128xf32>
    %84 = tpu.matmul %81, %83, %cst_44 {dimension_numbers = #tpu.dot_dimension_numbers<[1], [0], [0], [1], [0, 0, 1, 1], [], []>} : vector<32x384xbf16>, vector<384x128xbf16>, vector<32x128xf32> -> vector<32x128xf32>
    %cst_45 = arith.constant dense<0.000000e+00> : vector<128xf32>
    %85 = vector.multi_reduction <add>, %84, %cst_45 [0] : vector<32x128xf32> to vector<128xf32>
    %86 = vector.shape_cast %85 : vector<128xf32> to vector<1x128xf32>
    %cst_46 = arith.constant 3.200000e+01 : f32
    %87 = vector.broadcast %cst_46 : f32 to vector<1x128xf32>
    %88 = arith.divf %86, %87 : vector<1x128xf32>
    %89 = vector.broadcast %88 : vector<1x128xf32> to vector<32x128xf32>
    %90 = arith.subf %84, %89 : vector<32x128xf32>
    %91 = arith.mulf %90, %90 : vector<32x128xf32>
    %cst_47 = arith.constant dense<0.000000e+00> : vector<128xf32>
    %92 = vector.multi_reduction <add>, %91, %cst_47 [0] : vector<32x128xf32> to vector<128xf32>
    %93 = vector.shape_cast %92 : vector<128xf32> to vector<1x128xf32>
    %cst_48 = arith.constant 3.200000e+01 : f32
    %94 = vector.broadcast %cst_48 : f32 to vector<1x128xf32>
    %95 = arith.divf %93, %94 : vector<1x128xf32>
    %cst_49 = arith.constant 9.99999974E-6 : f32
    %96 = vector.broadcast %cst_49 : f32 to vector<1x128xf32>
    %97 = arith.addf %95, %96 : vector<1x128xf32>
    %98 = math.rsqrt %97 : vector<1x128xf32>
    %99 = arith.mulf %30, %98 : vector<1x128xf32>
    %100 = vector.broadcast %99 : vector<1x128xf32> to vector<32x128xf32>
    %101 = arith.mulf %90, %100 : vector<32x128xf32>
    %102 = vector.broadcast %31 : vector<1x128xf32> to vector<32x128xf32>
    %103 = arith.addf %101, %102 : vector<32x128xf32>
    %104 = arith.addf %103, %4 : vector<32x128xf32>
    %cst_50 = arith.constant 0.000000e+00 : f32
    %105 = vector.broadcast %cst_50 : f32 to vector<32x128xf32>
    %106 = arith.maximumf %104, %105 : vector<32x128xf32>
    %107 = arith.truncf %106 : vector<32x128xf32> to vector<32x128xbf16>
    %c0_51 = arith.constant 0 : index
    %c0_52 = arith.constant 0 : index
    %108 = vector.load %arg5[%c0_51, %c0_52] : memref<32x128xbf16, #tpu.memory_space<vmem>>, vector<32x128xbf16>
    tpu.vector_store %arg5[%c0_51, %c0_52], %107 {strides = array<i32>} : memref<32x128xbf16, #tpu.memory_space<vmem>>, vector<32x128xbf16>,
    %c0_53 = arith.constant 0 : index
    %c0_54 = arith.constant 0 : index
    %109 = vector.load %arg4[%c0_53, %c0_54] : memref<32x128xbf16, #tpu.memory_space<vmem>>, vector<32x128xbf16>
    tpu.vector_store %arg4[%c0_53, %c0_54], %107 {strides = array<i32>} : memref<32x128xbf16, #tpu.memory_space<vmem>>, vector<32x128xbf16>,
    return
  }
  func.func @transform_0(%arg0: i32) -> (i32, i32) {
    %c0_i32 = arith.constant 0 : i32
    %c0_i32_0 = arith.constant 0 : i32
    %c0_i32_1 = arith.constant 0 : i32
    return %c0_i32, %c0_i32_0 : i32, i32
  }
  func.func @transform_1(%arg0: i32) -> (i32, i32, i32, i32) {
    %c0_i32 = arith.constant 0 : i32
    %c0_i32_0 = arith.constant 0 : i32
    %c0_i32_1 = arith.constant 0 : i32
    %c0_i32_2 = arith.constant 0 : i32
    return %arg0, %c0_i32, %c0_i32_0, %c0_i32_1 : i32, i32, i32, i32
  }
  func.func @transform_2(%arg0: i32) -> (i32, i32, i32) {
    %c0_i32 = arith.constant 0 : i32
    %c0_i32_0 = arith.constant 0 : i32
    %c0_i32_1 = arith.constant 0 : i32
    return %arg0, %c0_i32, %c0_i32_0 : i32, i32, i32
  }
  func.func @transform_3(%arg0: i32) -> (i32, i32) {
    %c0_i32 = arith.constant 0 : i32
    %c0_i32_0 = arith.constant 0 : i32
    %c0_i32_1 = arith.constant 0 : i32
    return %c0_i32, %c0_i32_0 : i32, i32
  }
}

</mosaic_0001>

<bundles_post_ra>
// kernel: resnet_stage_forward.1
= control target key start
LH: loop header
LB: loop body
LE: loop exit
PB: predicated region body
PF: predicated region fallthrough
CT: control target
= control target key end

     0   :  { %8 = vsyncpa [#allocation5], 0  ;;  %s1888_s0 = inlined_call_operand.vmem [shape: bf16[32,128], index: 0, kind: input, shape index: {}]   ;;  %s1889_s1 = inlined_call_operand.hbm [shape: bf16[2,2,384,128], index: 1, kind: input, shape index: {}]   ;;  %s1890_s2 = inlined_call_operand.vmem [shape: f32[2,4,128], index: 2, kind: input, shape index: {}]   ;;  %s1891_s3 = inlined_call_operand.vmem [shape: bf16[32,128], index: 3, kind: output, shape index: {}]  }
   0x1   :  { %10 = vsyncpa [#allocation5 + $0x1], 0  ;;  %s1584_s12 = smov 0   ;;  %s1586_s13 = smov 0  }
   0x2   :  { %s1588_s14 = smov 0   ;;  %s1590_s15 = smov 0  }
   0x3 LB: > { %s1603_s16 = sadd.s32 4294967295, %s1558_s15   ;;  %s1606_s17 = sadd.s32 1, %s1558_s15   ;;  %s1558_s15 = sphi %s1590_s15, %s1914_s15   ;;  %s1554_s14 = sphi %s1588_s14, %s1913_s14   ;;  %s1550_s13 = sphi %s1586_s13, %s1912_s13   ;;  %s1546_s12 = sphi %s1584_s12, %s1911_s12  }
   0x4   : > { %s41_s18 = ssub.s32 %s1558_s15, %s1606_s17  ;;  %s44_s19 = sadd.s32 1, %s1554_s14 }
   0x5   : > { %p42_p0 = scmp.eq.s32.totalorder %s41_s18, 0  ;;  %p51_p1 = scmp.ne.s32.totalorder %s1554_s14, %s1550_s13 }
   0x6   : > { %p52_p2 = scmp.eq.s32.totalorder %s1558_s15, 0  ;;  %p57_p3 = scmp.ne.s32.totalorder %s1550_s13, %s1546_s12 }
   0x7   : > { %s1616_s20 = scalar_select %p42_p0, %s1554_s14, %s44_s19  }
   0x8   : > { %p53_p4 = por %p52_p2, %p51_p1  ;;  %p58_p5 = scmp.eq.s32.totalorder %s1603_s16, 0 }
   0x9   : > { %p1404_p6 = scmp.lt.s32.totalorder %s1558_s15, 2  ;;  %s131_s22 = sand.u32 1, %s1554_s14  }
   0xa   : > { %p1620_p7 = por %p58_p5, %p57_p3  ;;  %s1395_s23 = smul.u32 384, %s131_s22 }
   0xb   : > { %s1396_s24 = smul.u32 6144, %s1558_s15  ;;  %p1626_p8 = pnand %p1404_p6, %p53_p4 }
   0xc   : > { %s135_s29 = scalar_lea.vmem [#allocation4], %s1395_s23  ;;  %s1638_s4 = scalar_lea.sflag [#allocation5], %s131_s22 }
   0xd   : > { %s1633_s28 = scalar_lea.hbm %s1889_s1, %s1396_s24  ;;  %s142_s30 = sshll.u32 %s135_s29, 4  ;;  %s1635_s30 = int_to_ptr.vmem [resolvable:$true] %s142_s30 }
   0xe   : > { %s1494_s5 = scalar_lea.hbm %s1633_s28, 6144  ;;  %p1496_p11 = pneg %p1626_p8 }
   0xf   : > { %p1495_p10 = scmp.ne.s32.totalorder %s1633_s28, %s1494_s5  ;;  %s1499_s8 = scalar_lea.hbm %s1889_s1, 12288 }
  0x10   : > { %p1500_p0 = scmp.lt.u32.totalorder %s1633_s28, %s1889_s1  ;;  %p1501_p1 = scmp.lt.u32.totalorder %s1499_s8, %s1494_s5 }
  0x11   : > { %p1497_p12 = pnand %p1496_p11, %p1495_p10  ;;  %p1503_p3 = scmp.lt.u32.totalorder %s1494_s5, %s1633_s28 }
  0x12   : > { %p1502_p2 = por %p1501_p1, %p1500_p0 }
  0x13   : > { %p1498_p13 = pneg %p1497_p12 }
  0x14   : > { %p1504_p4 = por %p1503_p3, %p1502_p2 }
  0x16   : > { %p1505_p5 = pnand %p1504_p4, %p1498_p13 }
  0x18   : > { %1508 = shalt.err (!%p1505_p5)
}
  0x19   : > { %s1509_s11 = scalar_lea.vmem %s1635_s30, 6144  ;;  %s1560_s12 = smov [#allocation4]  }
  0x1a   : > { %p1510_p6 = scmp.ne.s32.totalorder %s1635_s30, %s1509_s11  ;;  %s1514_s18 = sshll.u32 %s1560_s12, 4  ;;  %s1515_s18 = int_to_ptr.vmem [resolvable:$false] %s1514_s18 }
  0x1b   : > { %s1516_s19 = scalar_lea.vmem %s1515_s18, 12288  ;;  %p1517_p9 = scmp.lt.s32.totalorder %s1635_s30, %s1515_s18 }
  0x1c   : > { %p1512_p10 = pnand %p1510_p6, %p1496_p11  ;;  %p1518_p0 = scmp.lt.s32.totalorder %s1516_s19, %s1509_s11 }
  0x1e   : > { %p1513_p12 = pneg %p1512_p10  ;;  %p1519_p1 = por %p1518_p0, %p1517_p9 }
  0x20   : > { %p1520_p2 = pnand %p1519_p1, %p1513_p12 }
  0x22   : > { %1523 = shalt.err (!%p1520_p2)
}
  0x23   : > { %s1561_s22 = smov 64   ;;  %s1562_s23 = smov 4  }
  0x24   : > { %1403 = dma.hbm_to_vmem [thread:$0]  (!%p1626_p8), %s1633_s28, 6144, %s1635_s30, %s1638_s4, %s1561_s22, %s1561_s22, %s1562_s23  }
  0x25   : > { %p157_p11 = scmp.lt.s32.totalorder %s1558_s15, 3  ;;  %p1894_p13 = scmp.ge.s32.totalorder %s1558_s15, 1 }
  0x27   : > { %p158_p3 = pnand %p1894_p13, %p157_p11 }
  0x28   : > { %s163_s24 = sand.u32 (!%p158_p3), 1, %s1550_s13  }
  0x29   : > { %161 = sbr.rel (%p158_p3) target bundleno = 684 (0x2ac), region = 32  ;;  %s164_s27 = scalar_lea.sflag (!%p158_p3), [#allocation5], %s163_s24 }
  0x2a   : > { %s1397_s26 = smul.u32 (!%p158_p3), 384, %s163_s24 }
  0x2c   : > { %s1670_s29 = scalar_lea.vmem (!%p158_p3), [#allocation4], %s1397_s26 }
  0x30   : > { %1541 = dma.done.wait (%p1620_p7), %s164_s27, 6144  }
  0x31   : > { %1543 = vsyncadd (%p1620_p7), %s164_s27, 4294961152  ;;  %p189_p9 = scmp.lt.s32.totalorder %s1603_s16, 1  ;;  %p1135_p8 = scmp.ne.s32.totalorder %s1603_s16, 0 }
  0x32   : > { %v1440_v0 = vld [vmem:[%s1888_s0] sm:$0xff] (!%p1135_p8)   ;;  %v1441_v1 = vld [vmem:[%s1888_s0 + $0x8] sm:$0xff] (!%p1135_p8)  }
  0x33   : > { %s190_s25 = scalar_select %p189_p9, %s1603_s16, 1 }
  0x34   : > { %197 = sbr.rel (%p1135_p8) target bundleno = 59 (0x3b), region = 40  ;;  %214 = vst [vmem:[#allocation2] sm:$0xff] (!%p1135_p8), %v1440_v0  ;;  %215 = vst [vmem:[#allocation2 + $0x8] sm:$0xff] (!%p1135_p8), %v1441_v1 }
  0x35   : > { %s1134_s28 = sshll.u32 %s190_s25, 2 }
  0x36   : > { %s1681_s4 = scalar_lea.vmem %s1890_s2, %s1134_s28 }
  0x3b PF: > { %v1442_v2 = vld [vmem:[%s1670_s29 + $0x40] sm:$0xff]   ;;  %v1445_v5 = vld [vmem:[%s1670_s29 + $0x48] sm:$0xff]   ;;  %v1448_v8 = vld [vmem:[%s1670_s29 + $0x50] sm:$0xff]   ;;  %v222_v10 = vlaneseq  ;;  %vm1563_vm4 = vmmov 1  }
  0x3c   : > { %v1443_v3 = vld [vmem:[%s1670_s29] sm:$0xff]   ;;  %1279 = vmatprep.subr.bf16.mxu0 %v1442_v2  ;;  %v1446_v6 = vld [vmem:[%s1670_s29 + $0x8] sm:$0xff]   ;;  %v1449_v9 = vld [vmem:[%s1670_s29 + $0x10] sm:$0xff]  }
  0x3d   : > { %v1444_v4 = vld [vmem:[%s1670_s29 + $0x80] sm:$0xff]   ;;  %1280 = vmatpush3.bf16.msra.mxu0 %v1443_v3  ;;  %v1447_v7 = vld [vmem:[%s1670_s29 + $0x88] sm:$0xff]   ;;  %v1450_v11 = vld [vmem:[%s1670_s29 + $0x90] sm:$0xff]   ;;  %v1702_v15 = vshrl.u32 %v222_v10, 7 }
  0x3e   : > { %1355 = vmatprep.subr.bf16.mxu1 %v1444_v4  ;;  %1281 = vmatprep.subr.bf16.mxu0 %v1445_v5  ;;  %v1451_v12 = vld [vmem:[%s1670_s29 + $0x58] sm:$0xff]   ;;  %v1454_v16 = vld [vmem:[%s1670_s29 + $0x60] sm:$0xff]   ;;  %v1457_v20 = vld [vmem:[%s1670_s29 + $0x68] sm:$0xff]  }
  0x3f   : > { %1356 = vmatpush3.bf16.msra.mxu1 %v1444_v4  ;;  %v1452_v13 = vld [vmem:[%s1670_s29 + $0x18] sm:$0xff]   ;;  %v1456_v17 = vld [vmem:[%s1670_s29 + $0xa0] sm:$0xff]   ;;  %v224_v19 = vadd.s32 8, %v1702_v15  ;;  %v226_v21 = vadd.s32 24, %v1702_v15  ;;  %v231_v22 = vand.u32 15, %v1702_v15  ;;  %v1459_v23 = vld [vmem:[%s1670_s29 + $0xa8] sm:$0xff]  }
  0x40   : > { %1357 = vmatprep.subr.bf16.mxu1 %v1447_v7  ;;  %v1453_v14 = vld [vmem:[%s1670_s29 + $0x98] sm:$0xff]   ;;  %v1455_v18 = vld [vmem:[%s1670_s29 + $0x20] sm:$0xff]   ;;  %v225_v24 = vadd.s32 16, %v1702_v15  ;;  %v1458_v25 = vld [vmem:[%s1670_s29 + $0x28] sm:$0xff]   ;;  %vm290_vm1 = vcmp.lt.s32.totalorder %v1702_v15, 1  ;;  %vm307_vm6 = vcmp.lt.s32.totalorder %v1702_v15, 7 }
  0x41   : > { %1282 = vmatpush3.bf16.msra.mxu0 %v1446_v6  ;;  %v238_v26 = vand.u32 15, %v224_v19  ;;  %v1460_v27 = vld [vmem:[%s1670_s29 + $0x70] sm:$0xff]   ;;  %v252_v28 = vand.u32 15, %v226_v21  ;;  %vm1717_vm0 = vcmp.ne.s32.totalorder %v231_v22, 0  ;;  %v1463_v33 = vld [vmem:[%s1670_s29 + $0x78] sm:$0xff]   ;;  %v1466_v5 = vld [vmem:[%s1670_s29 + $0x100] sm:$0xff]  }
  0x42   : > { %1283 = vmatprep.subr.bf16.mxu0 %v1448_v8  ;;  %v1462_v29 = vld [vmem:[%s1670_s29 + $0xb0] sm:$0xff]   ;;  %v245_v30 = vand.u32 15, %v225_v24  ;;  %v217_v35 = vld [vmem:[#allocation2 + $0x8] sm:$0xff]  ;;  %vm1744_vm5 = vmpackc.low %vm1563_vm4, %vm1717_vm0 }
  0x43   : > { %1358 = vmatpush3.bf16.msra.mxu1 %v1447_v7  ;;  %v1461_v31 = vld [vmem:[%s1670_s29 + $0x30] sm:$0xff]   ;;  %vm1723_vm2 = vcmp.ne.s32.totalorder %v238_v26, 15  ;;  %vm1727_vm3 = vcmp.ne.s32.totalorder %v252_v28, 15  ;;  %v1464_v38 = vld [vmem:[%s1670_s29 + $0x38] sm:$0xff]   ;;  %v1737_v42 = vunpack.c.h.bf16 %v217_v35  ;;  %v1739_v43 = vunpack.c.l.bf16 %v217_v35  ;;  %v1467_v6 = vld [vmem:[%s1670_s29 + $0xc0] sm:$0xff]  }
  0x44   : > { %1359 = vmatprep.subr.bf16.mxu1 %v1450_v11  ;;  %v216_v34 = vld [vmem:[#allocation2] sm:$0xff]  ;;  %v1465_v39 = vld [vmem:[%s1670_s29 + $0xb8] sm:$0xff]   ;;  %vm1749_vm7 = vcmp.ne.s32.totalorder %v245_v30, 0  ;;  %vm1760_vm8 = vmpackc.low %vm1723_vm2, %vm1563_vm4 }
  0x45   : > { %1284 = vmatpush3.bf16.msra.mxu0 %v1449_v9  ;;  %v1733_v40 = vunpack.c.l.bf16 %v216_v34  ;;  %v1735_v41 = vunpack.c.h.bf16 %v216_v34  ;;  %550 = vmatprep.mubr.bf16.mxu0 %v216_v34  ;;  %v289_v48 = vrot.slane %v1737_v42, 7  ;;  %v305_v52 = vrot.slane %v1739_v43, 1  ;;  %vm1770_vm9 = vmpackc.low %vm1727_vm3, %vm1563_vm4  ;;  %v1468_v7 = vld [vmem:[%s1670_s29 + $0x140] sm:$0xff]   ;;  %v1469_v8 = vld [vmem:[%s1670_s29 + $0x108] sm:$0xff]  }
  0x46   : > { %1285 = vmatprep.subr.bf16.mxu0 %v1451_v12  ;;  %v306_v53 = vrot.slane %v1737_v42, 1  ;;  %v288_v55 = vrot.slane %v1739_v43, 7  ;;  %vm1790_vm10 = vmpackc.low %vm1563_vm4, %vm1749_vm7  ;;  %v1470_v9 = vld [vmem:[%s1670_s29 + $0xc8] sm:$0xff]   ;;  %v1473_v12 = vld [vmem:[%s1670_s29 + $0xd0] sm:$0xff]  }
  0x47   : > { %1360 = vmatpush3.bf16.msra.mxu1 %v1450_v11  ;;  %v286_v46 = vrot.slane %v1733_v40, 7  ;;  %v287_v47 = vrot.slane %v1735_v41, 7  ;;  %v303_v49 = vrot.slane %v1733_v40, 1  ;;  %v304_v51 = vrot.slane %v1735_v41, 1  ;;  %v1471_v10 = vld [vmem:[%s1670_s29 + $0x148] sm:$0xff]   ;;  %v1472_v11 = vld [vmem:[%s1670_s29 + $0x110] sm:$0xff]  }
  0x48   : > { %1361 = vmatprep.subr.bf16.mxu1 %v1453_v14  ;;  %v308_v61 = vsel %vm307_vm6, %v305_v52, %v306_v53  ;;  %v291_v2 = vsel %vm290_vm1, %v288_v55, %v289_v48  ;;  %v1479_v19 = vld [vmem:[%s1670_s29 + $0xe0] sm:$0xff]   ;;  %v1481_v21 = vld [vmem:[%s1670_s29 + $0x128] sm:$0xff]   ;;  %v1484_v24 = vld [vmem:[%s1670_s29 + $0x130] sm:$0xff]  }
  0x49   : > { %1286 = vmatpush3.bf16.msra.mxu0 %v1452_v13  ;;  %v293_v56 = vsel %vm290_vm1, %v286_v46, %v287_v47  ;;  %v294_v57 = vsel %vm290_vm1, %v289_v48, %v286_v46  ;;  %v309_v59 = vsel %vm307_vm6, %v304_v51, %v305_v52  ;;  %v310_v60 = vsel %vm307_vm6, %v303_v49, %v304_v51  ;;  %v1474_v13 = vld [vmem:[%s1670_s29 + $0x150] sm:$0xff]   ;;  %v1482_v22 = vld [vmem:[%s1670_s29 + $0xe8] sm:$0xff]   ;;  %v1488_v28 = vld [vmem:[%s1670_s29 + $0xf8] sm:$0xff]  }
  0x4a   : > { %1287 = vmatprep.subr.bf16.mxu0 %v1454_v16  ;;  %v1256_v58 = vpack.c.bf16 %v293_v56, %v294_v57  ;;  %v1262_v62 = vpack.c.bf16 %v309_v59, %v310_v60  ;;  %v311_v63 = vsel %vm307_vm6, %v306_v53, %v303_v49  ;;  %v292_v3 = vsel %vm290_vm1, %v287_v47, %v288_v55  ;;  %v1476_v16 = vld [vmem:[%s1670_s29 + $0xd8] sm:$0xff]   ;;  %v1486_v26 = vld [vmem:[%s1670_s29 + $0x170] sm:$0xff]  }
  0x4b   : > { %1362 = vmatpush3.bf16.msra.mxu1 %v1453_v14  ;;  %v1265_v1 = vpack.c.bf16 %v311_v63, %v308_v61  ;;  %v1259_v4 = vpack.c.bf16 %v291_v2, %v292_v3  ;;  %v1475_v14 = vld [vmem:[%s1670_s29 + $0x118] sm:$0xff]  }
  0x4c   : > { %1363 = vmatprep.subr.bf16.mxu1 %v1456_v17  ;;  %1371 = vmatprep.mubr.msk.bf16.mxu1 %vm1760_vm8, %v1262_v62 }
  0x4d   : > { %1288 = vmatpush3.bf16.msra.mxu0 %v1455_v18  ;;  %v1478_v18 = vld [vmem:[%s1670_s29 + $0x120] sm:$0xff]  }
  0x4e   : > { %1289 = vmatprep.subr.bf16.mxu0 %v1457_v20  ;;  %v1480_v20 = vld [vmem:[%s1670_s29 + $0x160] sm:$0xff]  }
  0x4f   : > { %1364 = vmatpush3.bf16.msra.mxu1 %v1456_v17  ;;  %v1477_v17 = vld [vmem:[%s1670_s29 + $0x158] sm:$0xff]  }
  0x50   : > { %1365 = vmatprep.subr.bf16.mxu1 %v1459_v23 }
  0x51   : > { %1290 = vmatpush3.bf16.msra.mxu0 %v1458_v25  ;;  %v1485_v25 = vld [vmem:[%s1670_s29 + $0xf0] sm:$0xff]  }
  0x52   : > { %1291 = vmatprep.subr.bf16.mxu0 %v1460_v27  ;;  %v1487_v27 = vld [vmem:[%s1670_s29 + $0x138] sm:$0xff]  }
  0x53   : > { %1366 = vmatpush3.bf16.msra.mxu1 %v1459_v23  ;;  %v1483_v23 = vld [vmem:[%s1670_s29 + $0x168] sm:$0xff]  }
  0x54   : > { %1367 = vmatprep.subr.bf16.mxu1 %v1462_v29 }
  0x55   : > { %1292 = vmatpush3.bf16.msra.mxu0 %v1461_v31 }
  0x56   : > { %1293 = vmatprep.subr.bf16.mxu0 %v1463_v33 }
  0x57   : > { %1368 = vmatpush3.bf16.msra.mxu1 %v1462_v29  ;;  %v1489_v29 = vld [vmem:[%s1670_s29 + $0x178] sm:$0xff]  }
  0x58   : > { %1369 = vmatprep.subr.bf16.mxu1 %v1465_v39 }
  0x59   : > { %1294 = vmatpush3.bf16.msra.mxu0 %v1464_v38 }
  0x5a   : > { %1317 = vmatprep.subr.bf16.mxu0 %v1466_v5 }
  0x5b   : > { %1370 = vmatpush3.bf16.msra.mxu1 %v1465_v39 }
  0x5c   : > { %1257 = vmatmul.mubr.msk.bf16.vlgmr.msra.gmra.mrb[0].mxu0 %vm1744_vm5, %v1256_v58  ;;  %1375 = vmatprep.subr.bf16.mxu1 %v1468_v7 }
  0x5d   : > { %558 = vmatprep.mubr.bf16.mxu0 %v217_v35  ;;  %1318 = vmatpush3.bf16.msra.mxu0 %v1467_v6 }
  0x5e   : > { %1372 = vmatmul.mubr.msk.bf16.vlgmr.msra.gmra.mrb[0].mxu1 %vm1770_vm9, %v1265_v1  ;;  %1319 = vmatprep.subr.bf16.mxu0 %v1469_v8 }
  0x5f   : > { %1376 = vmatpush3.bf16.msra.mxu1 %v1468_v7 }
  0x60   : > { %1377 = vmatprep.subr.bf16.mxu1 %v1471_v10 }
  0x61   : > { %1320 = vmatpush3.bf16.msra.mxu0 %v1470_v9 }
  0x62   : > { %1321 = vmatprep.subr.bf16.mxu0 %v1472_v11 }
  0x63   : > { %1378 = vmatpush3.bf16.msra.mxu1 %v1471_v10 }
  0x64   : > { %1260 = vmatmul.mubr.msk.bf16.gmra.mrb[4].mxu0 %vm1790_vm10, %v1259_v4  ;;  %1379 = vmatprep.subr.bf16.mxu1 %v1474_v13 }
  0x65   : > { %1322 = vmatpush3.bf16.msra.mxu0 %v1473_v12 }
  0x66   : > { %1323 = vmatprep.subr.bf16.mxu0 %v1475_v14 }
  0x67   : > { %1380 = vmatpush3.bf16.msra.mxu1 %v1474_v13 }
  0x68   : > { %1381 = vmatprep.subr.bf16.mxu1 %v1477_v17 }
  0x69   : > { %1324 = vmatpush3.bf16.msra.mxu0 %v1476_v16 }
  0x6a   : > { %1325 = vmatprep.subr.bf16.mxu0 %v1478_v18 }
  0x6b   : > { %1382 = vmatpush3.bf16.msra.mxu1 %v1477_v17 }
  0x6c   : > { %1383 = vmatprep.subr.bf16.mxu1 %v1480_v20 }
  0x6d   : > { %1326 = vmatpush3.bf16.msra.mxu0 %v1479_v19 }
  0x6e   : > { %1327 = vmatprep.subr.bf16.mxu0 %v1481_v21 }
  0x6f   : > { %1384 = vmatpush3.bf16.msra.mxu1 %v1480_v20 }
  0x70   : > { %1385 = vmatprep.subr.bf16.mxu1 %v1483_v23 }
  0x71   : > { %1328 = vmatpush3.bf16.msra.mxu0 %v1482_v22 }
  0x72   : > { %1329 = vmatprep.subr.bf16.mxu0 %v1484_v24  ;;  %v1831_v24 = vld [vmem:[%s1681_s4] sm:$0xf] }
  0x73   : > { %1386 = vmatpush3.bf16.msra.mxu1 %v1483_v23 }
  0x74   : > { %1387 = vmatprep.subr.bf16.mxu1 %v1486_v26 }
  0x75   : > { %1330 = vmatpush3.bf16.msra.mxu0 %v1485_v25  ;;  %v650_v25 = vsub.s32 0, %v1702_v15 }
  0x76   : > { %1331 = vmatprep.subr.bf16.mxu0 %v1487_v27 }
  0x77   : > { %1388 = vmatpush3.bf16.msra.mxu1 %v1486_v26  ;;  %v658_v26 = vsub.s32 1, %v1702_v15 }
  0x78   : > { %1389 = vmatprep.subr.bf16.mxu1 %v1489_v29 }
  0x79   : > { %1332 = vmatpush3.bf16.msra.mxu0 %v1488_v28 }
  0x7b   : > { %1390 = vmatpush3.bf16.msra.mxu1 %v1489_v29 }
 0x12f   : > { %v1295_v30 = vpop.f32.mrb[0].mxu0 }
 0x130   : > { %v1296_v31 = vpop.f32.mrb[1].mxu0 }
 0x131   : > { %v1297_v32 = vadd.f32 %v1296_v31, %v1295_v30  ;;  %v1298_v33 = vpop.f32.mrb[2].mxu0  ;;  %v1373_v34 = vpop.f32.mrb[0].mxu1  ;;  %v659_v30 = vrot.slane %v1831_v24, %v658_v26 }
 0x132   : > { %v1299_v35 = vpop.f32.mrb[3].mxu0  ;;  %v601_v36 = vpop.f32.mrb[1].mxu1 }
 0x133   : > { %v1300_v37 = vadd.f32 %v1299_v35, %v1298_v33  ;;  %v602_v38 = vadd.f32 %v1297_v32, %v601_v36  ;;  %v1374_v39 = vpop.f32.mrb[2].mxu1 }
 0x134   : > { %v604_v45 = vpop.f32.mrb[3].mxu1 }
 0x135   : > { %v605_v46 = vadd.f32 %v1300_v37, %v604_v45 }
 0x137   : > { %v616_v47 = vadd.f32 %v605_v46, %v602_v38  ;;  %v1301_v48 = vpop.f32.mrb[4].mxu0 }
 0x138   : > { %v1302_v49 = vpop.f32.mrb[5].mxu0 }
 0x139   : > { %v1303_v51 = vadd.f32 %v1302_v49, %v1301_v48  ;;  %v1304_v52 = vpop.f32.mrb[6].mxu0 }
 0x13a   : > { %v1305_v53 = vpop.f32.mrb[7].mxu0 }
 0x13b   : > { %v610_v55 = vadd.f32 %v1373_v34, %v1303_v51  ;;  %v1306_v56 = vadd.f32 %v1305_v53, %v1304_v52 }
 0x13d   : > { %v617_v57 = vadd.f32 %v616_v47, %v610_v55  ;;  %v613_v58 = vadd.f32 %v1374_v39, %v1306_v56 }
 0x13f   : > { %v618_v59 = vadd.f32 %v617_v57, %v613_v58 }
 0x141   : > { %v619_v60 = vrot.slane %v618_v59, 4 }
 0x143   : > { %v620_v61 = vadd.f32 %v619_v60, %v618_v59 }
 0x145   : > { %v621_v62 = vrot.slane %v620_v61, 2 }
 0x147   : > { %v622_v63 = vadd.f32 %v621_v62, %v620_v61 }
 0x149   : > { %v623_v1 = vrot.slane %v622_v63, 1 }
 0x14b   : > { %v624_v2 = vadd.f32 %v623_v1, %v622_v63 }
 0x14d   : > { %v626_v3 = vmul.f32 0.03125, %v624_v2 }
 0x14f   : > { %v627_v4 = vsub.f32 %v602_v38, %v626_v3  ;;  %v628_v5 = vsub.f32 %v605_v46, %v626_v3  ;;  %v629_v6 = vsub.f32 %v610_v55, %v626_v3  ;;  %v630_v7 = vsub.f32 %v613_v58, %v626_v3 }
 0x151   : > { %v631_v8 = vmul.f32 %v627_v4, %v627_v4  ;;  %v632_v9 = vmul.f32 %v628_v5, %v628_v5  ;;  %v633_v10 = vmul.f32 %v629_v6, %v629_v6  ;;  %v634_v12 = vmul.f32 %v630_v7, %v630_v7 }
 0x153   : > { %v635_v11 = vadd.f32 %v632_v9, %v631_v8 }
 0x155   : > { %v636_v13 = vadd.f32 %v635_v11, %v633_v10 }
 0x157   : > { %v637_v14 = vadd.f32 %v636_v13, %v634_v12 }
 0x159   : > { %v638_v16 = vrot.slane %v637_v14, 4 }
 0x15b   : > { %v639_v17 = vadd.f32 %v638_v16, %v637_v14 }
 0x15d   : > { %v640_v18 = vrot.slane %v639_v17, 2 }
 0x15f   : > { %v641_v19 = vadd.f32 %v640_v18, %v639_v17 }
 0x161   : > { %v642_v20 = vrot.slane %v641_v19, 1 }
 0x163   : > { %v643_v21 = vadd.f32 %v642_v20, %v641_v19 }
 0x165   : > { %v644_v22 = vmul.f32 0.03125, %v643_v21 }
 0x167   : > { %v645_v23 = vadd.f32 1e-05, %v644_v22 }
 0x169   : > { %1490 = vrsqrt.f32 %v645_v23 }
 0x173   : > { %v1491_v27 = vpop.eup %1490 }
 0x174   : > { %v647_v28 = vmul.f32 %v1491_v27, %v1831_v24 }
 0x176   : > { %v651_v29 = vrot.slane %v647_v28, %v650_v25 }
 0x178   : > { %v654_v31 = vmul.f32 %v651_v29, %v629_v6  ;;  %v655_v32 = vmul.f32 %v651_v29, %v630_v7  ;;  %v652_v33 = vmul.f32 %v651_v29, %v627_v4  ;;  %v653_v34 = vmul.f32 %v651_v29, %v628_v5 }
 0x17a   : > { %v663_v35 = vadd.f32 %v659_v30, %v655_v32  ;;  %v660_v36 = vadd.f32 %v659_v30, %v652_v33  ;;  %v661_v37 = vadd.f32 %v659_v30, %v653_v34  ;;  %v662_v38 = vadd.f32 %v659_v30, %v654_v31 }
 0x17c   : > { %v667_v39 = vmax.f32 %v663_v35, 0.0  ;;  %v664_v45 = vmax.f32 %v660_v36, 0.0  ;;  %v665_v46 = vmax.f32 %v661_v37, 0.0  ;;  %v666_v47 = vmax.f32 %v662_v38, 0.0 }
 0x17e   : > { %v675_v48 = vrot.slane %v667_v39, 7  ;;  %v691_v49 = vrot.slane %v667_v39, 1  ;;  %v668_v51 = vpack.c.bf16 %v665_v46, %v664_v45  ;;  %v672_v52 = vrot.slane %v664_v45, 7 }
 0x17f   : > { %v673_v53 = vrot.slane %v665_v46, 7  ;;  %v688_v55 = vrot.slane %v664_v45, 1  ;;  %v689_v56 = vrot.slane %v665_v46, 1  ;;  %v690_v57 = vrot.slane %v666_v47, 1 }
 0x180   : > { %v679_v58 = vsel %vm290_vm1, %v675_v48, %v672_v52  ;;  %935 = vmatprep.mubr.bf16.mxu0 %v668_v51  ;;  %v669_v59 = vpack.c.bf16 %v667_v39, %v666_v47  ;;  %v674_v60 = vrot.slane %v666_v47, 7 }
 0x181   : > { %v678_v61 = vsel %vm290_vm1, %v672_v52, %v673_v53  ;;  %v693_v62 = vsel %vm307_vm6, %v689_v56, %v690_v57  ;;  %v694_v63 = vsel %vm307_vm6, %v688_v55, %v689_v56  ;;  %v692_v1 = vsel %vm307_vm6, %v690_v57, %v691_v49 }
 0x182   : > { %v1268_v2 = vpack.c.bf16 %v678_v61, %v679_v58  ;;  %v1274_v3 = vpack.c.bf16 %v693_v62, %v694_v63  ;;  %v695_v4 = vsel %vm307_vm6, %v691_v49, %v688_v55  ;;  %v676_v5 = vsel %vm290_vm1, %v674_v60, %v675_v48 }
 0x183   : > { %v1277_v6 = vpack.c.bf16 %v695_v4, %v692_v1  ;;  %v677_v7 = vsel %vm290_vm1, %v673_v53, %v674_v60  ;;  %v1034_v63 = vsub.s32 2, %v1702_v15  ;;  %v1042_v1 = vsub.s32 3, %v1702_v15 }
 0x184   : > { %1269 = vmatmul.mubr.msk.bf16.vlgmr.msra.gmra.mrb[8].mxu0 %vm1744_vm5, %v1268_v2  ;;  %1391 = vmatprep.mubr.msk.bf16.mxu1 %vm1760_vm8, %v1274_v3  ;;  %v1271_v8 = vpack.c.bf16 %v676_v5, %v677_v7 }
 0x185   : > { %943 = vmatprep.mubr.bf16.mxu0 %v669_v59  ;;  %1392 = vmatmul.mubr.msk.bf16.vlgmr.msra.gmra.mrb[4].mxu1 %vm1770_vm9, %v1277_v6  ;;  %v1043_v5 = vrot.slane %v1831_v24, %v1042_v1 }
 0x18c   : > { %1272 = vmatmul.mubr.msk.bf16.gmra.mrb[12].mxu0 %vm1790_vm10, %v1271_v8 }
 0x257   : > { %v1333_v9 = vpop.f32.mrb[8].mxu0 }
 0x258   : > { %v1334_v10 = vpop.f32.mrb[9].mxu0  ;;  %v1393_v11 = vpop.f32.mrb[4].mxu1 }
 0x259   : > { %v1335_v12 = vadd.f32 %v1334_v10, %v1333_v9  ;;  %v1336_v13 = vpop.f32.mrb[10].mxu0  ;;  %v986_v14 = vpop.f32.mrb[5].mxu1 }
 0x25a   : > { %v1337_v16 = vpop.f32.mrb[11].mxu0  ;;  %v1394_v44 = vpop.f32.mrb[6].mxu1 }
 0x25b   : > { %v987_v17 = vadd.f32 %v1335_v12, %v986_v14  ;;  %v1338_v18 = vadd.f32 %v1337_v16, %v1336_v13  ;;  %v989_v50 = vpop.f32.mrb[7].mxu1 }
 0x25d   : > { %v990_v19 = vadd.f32 %v1338_v18, %v989_v50 }
 0x25f   : > { %v1001_v20 = vadd.f32 %v990_v19, %v987_v17  ;;  %v1339_v21 = vpop.f32.mrb[12].mxu0 }
 0x260   : > { %v1340_v22 = vpop.f32.mrb[13].mxu0 }
 0x261   : > { %v1341_v54 = vadd.f32 %v1340_v22, %v1339_v21  ;;  %v1342_v23 = vpop.f32.mrb[14].mxu0 }
 0x262   : > { %v1343_v25 = vpop.f32.mrb[15].mxu0 }
 0x263   : > { %v995_v0 = vadd.f32 %v1393_v11, %v1341_v54  ;;  %v1344_v26 = vadd.f32 %v1343_v25, %v1342_v23 }
 0x265   : > { %v1002_v27 = vadd.f32 %v1001_v20, %v995_v0  ;;  %v998_v28 = vadd.f32 %v1394_v44, %v1344_v26 }
 0x267   : > { %v1003_v29 = vadd.f32 %v1002_v27, %v998_v28 }
 0x269   : > { %v1004_v30 = vrot.slane %v1003_v29, 4 }
 0x26b   : > { %v1005_v31 = vadd.f32 %v1004_v30, %v1003_v29 }
 0x26d   : > { %v1006_v32 = vrot.slane %v1005_v31, 2 }
 0x26f   : > { %v1007_v33 = vadd.f32 %v1006_v32, %v1005_v31 }
 0x271   : > { %v1008_v34 = vrot.slane %v1007_v33, 1 }
 0x273   : > { %v1009_v35 = vadd.f32 %v1008_v34, %v1007_v33 }
 0x275   : > { %v1010_v36 = vmul.f32 0.03125, %v1009_v35 }
 0x277   : > { %v1011_v37 = vsub.f32 %v987_v17, %v1010_v36  ;;  %v1012_v38 = vsub.f32 %v990_v19, %v1010_v36  ;;  %v1013_v39 = vsub.f32 %v995_v0, %v1010_v36  ;;  %v1014_v45 = vsub.f32 %v998_v28, %v1010_v36 }
 0x279   : > { %v1015_v46 = vmul.f32 %v1011_v37, %v1011_v37  ;;  %v1016_v47 = vmul.f32 %v1012_v38, %v1012_v38  ;;  %v1017_v48 = vmul.f32 %v1013_v39, %v1013_v39  ;;  %v1018_v51 = vmul.f32 %v1014_v45, %v1014_v45 }
 0x27b   : > { %v1019_v49 = vadd.f32 %v1016_v47, %v1015_v46 }
 0x27d   : > { %v1020_v52 = vadd.f32 %v1019_v49, %v1017_v48 }
 0x27f   : > { %v1021_v53 = vadd.f32 %v1020_v52, %v1018_v51 }
 0x281   : > { %v1022_v55 = vrot.slane %v1021_v53, 4 }
 0x283   : > { %v1023_v56 = vadd.f32 %v1022_v55, %v1021_v53 }
 0x285   : > { %v1024_v57 = vrot.slane %v1023_v56, 2 }
 0x287   : > { %v1025_v58 = vadd.f32 %v1024_v57, %v1023_v56 }
 0x289   : > { %v1026_v59 = vrot.slane %v1025_v58, 1 }
 0x28b   : > { %v1027_v60 = vadd.f32 %v1026_v59, %v1025_v58 }
 0x28d   : > { %v1028_v61 = vmul.f32 0.03125, %v1027_v60 }
 0x28f   : > { %v1029_v62 = vadd.f32 1e-05, %v1028_v61 }
 0x291   : > { %1492 = vrsqrt.f32 %v1029_v62 }
 0x29b   : > { %v1493_v2 = vpop.eup %1492 }
 0x29c   : > { %v1031_v3 = vmul.f32 %v1493_v2, %v1831_v24 }
 0x29e   : > { %v1035_v4 = vrot.slane %v1031_v3, %v1034_v63 }
 0x2a0   : > { %v1036_v6 = vmul.f32 %v1035_v4, %v1011_v37  ;;  %v1037_v7 = vmul.f32 %v1035_v4, %v1012_v38  ;;  %v1038_v8 = vmul.f32 %v1035_v4, %v1013_v39  ;;  %v1039_v9 = vmul.f32 %v1035_v4, %v1014_v45 }
 0x2a2   : > { %v1044_v10 = vadd.f32 %v1043_v5, %v1036_v6  ;;  %v1045_v11 = vadd.f32 %v1043_v5, %v1037_v7  ;;  %v1046_v12 = vadd.f32 %v1043_v5, %v1038_v8  ;;  %v1047_v13 = vadd.f32 %v1043_v5, %v1039_v9 }
 0x2a4   : > { %v1048_v14 = vadd.f32 %v1044_v10, %v1733_v40  ;;  %v1049_v16 = vadd.f32 %v1045_v11, %v1735_v41  ;;  %v1050_v15 = vadd.f32 %v1046_v12, %v1739_v43  ;;  %v1051_v44 = vadd.f32 %v1047_v13, %v1737_v42 }
 0x2a6   : > { %v1052_v17 = vmax.f32 %v1048_v14, 0.0  ;;  %v1053_v18 = vmax.f32 %v1049_v16, 0.0  ;;  %v1054_v50 = vmax.f32 %v1050_v15, 0.0  ;;  %v1055_v24 = vmax.f32 %v1051_v44, 0.0 }
 0x2a8   : > { %v1056_v19 = vpack.c.bf16 %v1053_v18, %v1052_v17  ;;  %v1057_v20 = vpack.c.bf16 %v1055_v24, %v1054_v50 }
 0x2aa   : > { %1058 = vst [vmem:[#allocation2] sm:$0xff] %v1056_v19  ;;  %1059 = vst [vmem:[#allocation2 + $0x8] sm:$0xff] %v1057_v20 }
 0x2ab   : > { %1248 = vst [vmem:[%s1891_s3] sm:$0xff] %v1056_v19   ;;  %1254 = vst [vmem:[%s1891_s3 + $0x8] sm:$0xff] %v1057_v20  }
 0x2ac PF: > { %p13_p7 = scmp.ge.s32.totalorder %s1606_s17, 4   ;;  %s1911_s12 = smov %s1550_s13 }
 0x2ad   : > { %s1912_s13 = smov %s1554_s14  ;;  %s1913_s14 = smov %s1616_s20 }
 0x2ae   : > { %s1914_s15 = smov %s1606_s17  ;;  %15 = sbr.rel (!%p13_p7) target bundleno = 3 (0x3), region = 76 }
 0x2b5   :  { %1089 = vsyncpa [#allocation5], 1 }
 0x2b6   :  { %1091 = vsyncpa [#allocation5 + $0x1], 1 }

</bundles_post_ra>
